<compile_context>
chip_gen: v7x
topology: tpu7x:2x2x1
jax: 0.10.0
libtpu: 0.0.40
codegen_flags: <defaults>
</compile_context>

<pallas_src>
import functools
import math

import jax
import jax.numpy as jnp
from jax.experimental import pallas as pl
from jax.experimental.pallas import tpu as pltpu


def _round_up(x, m):
    return ((x + m - 1) // m) * m


def _vmem_capacity_bytes():
    try:
        return int(pltpu.get_tpu_info().vmem_capacity_bytes)
    except Exception:
        return 64 * 1024 * 1024          # conservative: v7x per-TC VMEM


def _choose_p_tile(P, ckk, vmem_cap, p_tile_cap=None):
    """Rows per P tile: as large as comfortably fits VMEM, capped at 2048."""
    row_bytes = ckk * 4
    tile_budget = max(512 * 1024, vmem_cap // 8)   # one (double-buffered) patch tile
    cap = (tile_budget // row_bytes) // 8 * 8
    cap = max(8, min(2048, cap))
    if p_tile_cap is not None:                     # test hook / manual override
        cap = max(8, min(cap, (p_tile_cap // 8) * 8))
    if P <= cap:
        return P                                   # single full-extent tile, no ragged tail
    return cap


def _pc_loss_kernel(patches_ref, rt_ref, u_ref, out_ref,
                    pred_ref, acc_sq_ref, acc_abs_ref, acc_r_ref, *,
                    precision, n_patches, lam, alpha, batch_size, n_err_elems,
                    p_tile, valid_p, needs_mask):
    """One (P-tile, batch) grid step of the PredictiveCodingLayer loss."""
    p = pl.program_id(0)          # P-tile index (outer)
    b = pl.program_id(1)          # batch index (inner)
    npt = pl.num_programs(0)
    nb = pl.num_programs(1)

    @pl.when(jnp.logical_and(p == 0, b == 0))
    def _init():
        acc_sq_ref[...] = jnp.zeros_like(acc_sq_ref)
        acc_abs_ref[...] = jnp.zeros_like(acc_abs_ref)
        acc_r_ref[...] = jnp.zeros_like(acc_r_ref)

    # Batch-invariant work, hoisted: prediction r_tile @ U and the r prior are
    # computed once per P tile (b == 0) and reused for every batch step.
    @pl.when(b == 0)
    def _per_p_tile():
        r = rt_ref[...]                                    # (p_tile, n_causes)
        pred_ref[...] = jnp.dot(r, u_ref[...],
                                preferred_element_type=jnp.float32)
        acc_r_ref[...] += jnp.sum(r * r, axis=0, keepdims=True)

    err = patches_ref[...] - pred_ref[...]                 # (p_tile, ckk), lane-dense
    if needs_mask:
        # Ragged last P tile: zero rows past the true patch count in-kernel
        # instead of padding the whole patches tensor in HBM.  r was padded
        # with exact zeros, so pred rows there are 0 and only the (garbage)
        # patch rows need masking; jnp.where (select) is NaN-safe.
        rows_left = valid_p - p * p_tile
        row_id = jax.lax.broadcasted_iota(jnp.int32, (p_tile, 1), 0)
        err = jnp.where(row_id < rows_left, err, 0.0)
    a = jnp.abs(err)                                        # one VPU pass, reused for L1 & L2
    # Lane-kept partial sums (sublane reduce only); final cross-lane reduce is
    # done once in the finalize step.
    acc_abs_ref[...] += jnp.sum(a, axis=0, keepdims=True)
    acc_sq_ref[...] += jnp.sum(a * a, axis=0, keepdims=True)

    @pl.when(jnp.logical_and(p == npt - 1, b == nb - 1))
    def _finalize():
        sum_sq = jnp.sum(acc_sq_ref[...])
        sum_abs = jnp.sum(acc_abs_ref[...])
        sum_r2 = jnp.sum(acc_r_ref[...])
        recon = precision * (sum_sq / batch_size) / n_patches
        mae = sum_abs / n_err_elems
        u = u_ref[...]
        uprior = lam * jnp.sum(u * u)                       # computed exactly once
        rprior = alpha * sum_r2 / n_patches                 # r.shape[0] == 1 in the module
        out_ref[0] = recon
        out_ref[1] = mae
        out_ref[2] = uprior
        out_ref[3] = rprior
        out_ref[4] = recon + uprior + rprior
        out_ref[5] = jnp.float32(0.0)
        out_ref[6] = jnp.float32(0.0)
        out_ref[7] = jnp.float32(0.0)


def _unfold_nchw(x, kernel_size, stride):
    """torch.nn.Unfold equivalent, returning (B, nph, npw, C, kh, kw).

    Patch index (nph, npw) is row-major and the feature order is (C, kh, kw),
    matching torch.nn.Unfold's flattened feature ordering.
    """
    kh, kw = kernel_size
    sh, sw = stride
    B, C, H, W = x.shape
    nph = (H - kh) // sh + 1
    npw = (W - kw) // sw + 1
    rows = []
    for i in range(kh):
        cols = []
        for j in range(kw):
            sub = jax.lax.slice(
                x,
                (0, 0, i, j),
                (B, C, i + (nph - 1) * sh + 1, j + (npw - 1) * sw + 1),
                (1, 1, sh, sw))                               # (B, C, nph, npw)
            cols.append(sub)
        rows.append(jnp.stack(cols, axis=-1))                 # (B, C, nph, npw, kw)
    patches = jnp.stack(rows, axis=-2)                        # (B, C, nph, npw, kh, kw)
    return jnp.transpose(patches, (0, 2, 3, 1, 4, 5))         # (B, nph, npw, C, kh, kw)


def _build_forward(input_size, n_causes, kernel_size, stride, padding,
                   nph, npw, precision, alpha, lam, p_tile_cap=None):
    """Returns a jitted fwd(x, U, r) -> (8,) packed losses."""
    C, H, W = input_size
    kh, kw = kernel_size
    ckk = C * kh * kw
    P = nph * npw

    vmem_cap = _vmem_capacity_bytes()
    p_tile = _choose_p_tile(P, ckk, vmem_cap, p_tile_cap)
    num_p_tiles = -(-P // p_tile)
    P_pad = num_p_tiles * p_tile           # only r is padded to this; patches are NOT
    needs_mask = (P % p_tile) != 0

    # Explicit scoped-VMEM budget: 2x patch tile (double buffer) + pred scratch
    # + r/U tiles + accumulators + elementwise temporaries, with 2x slack.
    need = 4 * (3 * p_tile * ckk + 2 * p_tile * n_causes
                + n_causes * ckk + 16 * ckk + 8 * n_causes)
    vmem_limit = int(min(3 * vmem_cap // 4, max(2 * need, 32 * 1024 * 1024)))

    def fwd(x, U, r):
        B = x.shape[0]
        pad_h, pad_w = padding
        xf = x.astype(jnp.float32)
        if pad_h or pad_w:
            xf = jnp.pad(xf, ((0, 0), (0, 0), (pad_h, pad_h), (pad_w, pad_w)))

        # TODO(synk): unfold still materialised in HBM by plain-JAX glue (see header).
        patches = _unfold_nchw(xf, kernel_size, stride).reshape(B, P, ckk)
        r_t = r.reshape(n_causes, P).T                         # (P, n_causes)
        if P_pad != P:
            # Tiny pad: only the (P, n_causes) matrix, never the patches tensor.
            r_t = jnp.pad(r_t, ((0, P_pad - P), (0, 0)))
        u_flat = U.reshape(n_causes, ckk)                      # (n_causes, ckk)

        kernel = functools.partial(
            _pc_loss_kernel,
            precision=float(precision),
            n_patches=float(P),
            lam=float(lam),
            alpha=float(alpha),
            batch_size=float(B),
            n_err_elems=float(B * ckk * P),
            p_tile=p_tile,
            valid_p=P,
            needs_mask=needs_mask,
        )

        flops = 2 * num_p_tiles * p_tile * n_causes * ckk + 6 * B * P_pad * ckk
        bytes_accessed = 4 * (B * P * ckk + P_pad * n_causes
                              + n_causes * ckk + 8)

        losses = pl.pallas_call(
            kernel,
            out_shape=jax.ShapeDtypeStruct((8,), jnp.float32),
            grid=(num_p_tiles, B),                         # batch innermost
            in_specs=[
                pl.BlockSpec((pl.Squeezed(), p_tile, ckk), lambda p, b: (b, p, 0)),
                pl.BlockSpec((p_tile, n_causes), lambda p, b: (p, 0)),
                pl.BlockSpec((n_causes, ckk), lambda p, b: (0, 0)),
            ],
            out_specs=pl.BlockSpec(memory_space=pltpu.MemorySpace.SMEM),
            scratch_shapes=[
                pltpu.VMEM((p_tile, ckk), jnp.float32),    # batch-invariant pred
                pltpu.VMEM((1, ckk), jnp.float32),         # sum(err^2), lane-kept
                pltpu.VMEM((1, ckk), jnp.float32),         # sum(|err|), lane-kept
                pltpu.VMEM((1, n_causes), jnp.float32),    # sum(r^2),  lane-kept
            ],
            compiler_params=pltpu.CompilerParams(
                dimension_semantics=("arbitrary", "arbitrary"),
                vmem_limit_bytes=vmem_limit),
            cost_estimate=pl.CostEstimate(
                flops=flops, transcendentals=0, bytes_accessed=bytes_accessed),
        )(patches, r_t, u_flat)
        return losses

    return jax.jit(fwd)


class PredictiveCodingLayerPallas:
    """JAX/Pallas re-implementation of PredictiveCodingLayer (identity f, default priors)."""

    def __init__(self, input_size, n_causes=32, kernel_size=16, stride=5, padding=0,
                 k1=0.1, k2=0.1, sigma2=1.0, alpha=0.1, lam=0.1, key=None,
                 p_tile_cap=None):
        def pair(v):
            return (v, v) if isinstance(v, int) else tuple(v)

        self.input_size = tuple(input_size)                    # (C, H, W)
        self.n_causes = n_causes
        self.kernel_size, self.stride, self.padding = (
            pair(kernel_size), pair(stride), pair(padding))
        C, H, W = self.input_size
        kh, kw = self.kernel_size
        sh, sw = self.stride
        ph, pw = self.padding
        self.n_patches_height = (H + 2 * ph - (kh - 1) - 1) // sh + 1
        self.n_patches_width = (W + 2 * pw - (kw - 1) - 1) // sw + 1
        self.n_patches = self.n_patches_height * self.n_patches_width
        self.ckk = C * kh * kw
        self.k1, self.k2 = k1, k2
        self.sigma2 = sigma2
        self.precision = 1.0 / sigma2
        self.alpha, self.lam = alpha, lam

        if key is None:
            key = jax.random.PRNGKey(0)
        ku, kr = jax.random.split(key)
        # xavier_uniform on U of shape (n_causes, C, kh, kw):
        fan_in = C * kh * kw
        fan_out = n_causes * kh * kw
        bound = math.sqrt(6.0 / (fan_in + fan_out))
        self.U = jax.random.uniform(ku, (n_causes, C, kh, kw), jnp.float32,
                                    minval=-bound, maxval=bound)
        # r ~ randn, shape (1, n_causes, nph, npw)
        self.r = jax.random.normal(
            kr, (1, n_causes, self.n_patches_height, self.n_patches_width),
            jnp.float32)

        self._fwd = _build_forward(
            self.input_size, self.n_causes, self.kernel_size, self.stride,
            self.padding, self.n_patches_height, self.n_patches_width,
            self.precision, self.alpha, self.lam, p_tile_cap=p_tile_cap)

        self.reconstruction_loss = 0.0
        self.r_prior_loss = 0.0
        self.U_prior_loss = 0.0
        self.total_loss = 0.0
        self.mean_abs_error = 0.0

    def forward(self, x):
        B, C, H, W = x.shape
        assert (C, H, W) == self.input_size
        losses = self._fwd(x, self.U, self.r)
        self.reconstruction_loss = losses[0]
        self.mean_abs_error = losses[1]
        self.U_prior_loss = losses[2]
        self.r_prior_loss = losses[3]
        self.total_loss = losses[4]
        # TODO(synk): like the original module, the final r.view(batch_size, ...)
        # is only well-defined for batch_size == 1; r is returned unchanged here.
        return self.r


def _reference_losses(layer, x):
    """Pure-JAX reference of the PyTorch forward, for a correctness check."""
    patches = _unfold_nchw(x.astype(jnp.float32), layer.kernel_size, layer.stride)
    # patches: (B, nph, npw, C, kh, kw); prediction in the same layout (f = id).
    pred = jnp.einsum('mckl,bmpq->bpqckl', layer.U, layer.r)
    err = patches - pred
    ss = jnp.sum(err ** 2, axis=(1, 2, 3, 4, 5))
    recon = layer.precision * jnp.mean(ss) / layer.n_patches
    mae = jnp.mean(jnp.abs(err))
    up = layer.lam * jnp.sum(layer.U ** 2)
    rp = layer.alpha * jnp.sum(layer.r ** 2) / layer.r.shape[0] / layer.n_patches
    return recon, mae, up, rp, recon + up + rp


if __name__ == "__main__":
    key = jax.random.PRNGKey(0)
    k_param, k_x = jax.random.split(key)

    # Small shapes consistent with the module: (C,H,W)=(4,16,16), kernel 8, stride 4
    # -> 3x3 patches, CKK = 4*8*8 = 256 (lane-dense multiple of 128).
    input_size = (4, 16, 16)
    layer = PredictiveCodingLayerPallas(
        input_size, n_causes=32, kernel_size=8, stride=4, padding=0,
        sigma2=1.0, alpha=0.1, lam=0.1, key=k_param)

    batch = 2
    x = jax.random.normal(k_x, (batch,) + input_size, jnp.float32)

    r_out = layer.forward(x)
    jax.block_until_ready(r_out)
    jax.block_until_ready(layer.total_loss)

    # sanity check against a pure-JAX reference of the torch forward.
    ref = _reference_losses(layer, x)
    got = (layer.reconstruction_loss, layer.mean_abs_error,
           layer.U_prior_loss, layer.r_prior_loss, layer.total_loss)
    for g, rv in zip(got, ref):
        assert jnp.allclose(g, rv, rtol=1e-3, atol=1e-3), (g, rv)

    # Second run with a forced small P tile so the multi-tile + masked
    # ragged-tail + batch-hoisted-matmul path is exercised and validated too.
    fwd_small_tile = _build_forward(
        layer.input_size, layer.n_causes, layer.kernel_size, layer.stride,
        layer.padding, layer.n_patches_height, layer.n_patches_width,
        layer.precision, layer.alpha, layer.lam, p_tile_cap=8)
    losses2 = fwd_small_tile(x, layer.U, layer.r)
    jax.block_until_ready(losses2)
    for i, rv in enumerate(ref):
        assert jnp.allclose(losses2[i], rv, rtol=1e-3, atol=1e-3), (i, losses2[i], rv)

    print("KERNEL_OK")
</pallas_src>

<mosaic_0001>
module attributes {stable_mosaic.version = 11 : i64} {
  func.func @_pc_loss_kernel(%arg0: i32, %arg1: i32, %arg2: memref<1x9x256xf32, #tpu.memory_space<vmem>>, %arg3: memref<9x32xf32, #tpu.memory_space<vmem>>, %arg4: memref<32x256xf32, #tpu.memory_space<vmem>>, %arg5: memref<8xf32, #tpu.memory_space<smem>>, %arg6: memref<9x256xf32, #tpu.memory_space<vmem>>, %arg7: memref<1x256xf32, #tpu.memory_space<vmem>>, %arg8: memref<1x256xf32, #tpu.memory_space<vmem>>, %arg9: memref<1x32xf32, #tpu.memory_space<vmem>>) attributes {dimension_semantics = [#tpu.dimension_semantics<arbitrary>, #tpu.dimension_semantics<arbitrary>], iteration_bounds = array<i64: 1, 2>, scalar_prefetch = 0 : i64, scratch_operands = 4 : i64, tpu.core_type = #tpu.core_type<tc>, window_params = [{transform_indices = @transform_0, window_bounds = array<i64: 1, 9, 256>}, {transform_indices = @transform_1, window_bounds = array<i64: 9, 32>}, {pipeline_mode = #tpu.pipeline_mode<synchronous>, transform_indices = @transform_2, window_bounds = array<i64: 32, 256>}, {transform_indices = @transform_3, window_bounds = array<i64: 8>}]} {
    %c0_i32 = arith.constant 0 : i32
    %0 = arith.cmpi eq, %arg0, %c0_i32 : i32
    %c0_i32_0 = arith.constant 0 : i32
    %1 = arith.cmpi eq, %arg1, %c0_i32_0 : i32
    %2 = arith.andi %0, %1 : i1
    %3 = arith.extui %2 : i1 to i32
    %c0_i32_1 = arith.constant 0 : i32
    %4 = arith.cmpi ne, %3, %c0_i32_1 : i32
    scf.if %4 {
      %cst_19 = arith.constant 0.000000e+00 : f32
      %29 = vector.broadcast %cst_19 : f32 to vector<1x256xf32>
      %c0_20 = arith.constant 0 : index
      %c0_21 = arith.constant 0 : index
      %30 = vector.load %arg7[%c0_20, %c0_21] : memref<1x256xf32, #tpu.memory_space<vmem>>, vector<1x256xf32>
      tpu.vector_store %arg7[%c0_20, %c0_21], %29 {strides = array<i32>} : memref<1x256xf32, #tpu.memory_space<vmem>>, vector<1x256xf32>,
      %cst_22 = arith.constant 0.000000e+00 : f32
      %31 = vector.broadcast %cst_22 : f32 to vector<1x256xf32>
      %c0_23 = arith.constant 0 : index
      %c0_24 = arith.constant 0 : index
      %32 = vector.load %arg8[%c0_23, %c0_24] : memref<1x256xf32, #tpu.memory_space<vmem>>, vector<1x256xf32>
      tpu.vector_store %arg8[%c0_23, %c0_24], %31 {strides = array<i32>} : memref<1x256xf32, #tpu.memory_space<vmem>>, vector<1x256xf32>,
      %cst_25 = arith.constant 0.000000e+00 : f32
      %33 = vector.broadcast %cst_25 : f32 to vector<1x32xf32>
      %c0_26 = arith.constant 0 : index
      %c0_27 = arith.constant 0 : index
      %34 = vector.load %arg9[%c0_26, %c0_27] : memref<1x32xf32, #tpu.memory_space<vmem>>, vector<1x32xf32>
      tpu.vector_store %arg9[%c0_26, %c0_27], %33 {strides = array<i32>} : memref<1x32xf32, #tpu.memory_space<vmem>>, vector<1x32xf32>,
    } else {
    }
    %c0_i32_2 = arith.constant 0 : i32
    %5 = arith.cmpi eq, %arg1, %c0_i32_2 : i32
    %6 = arith.extui %5 : i1 to i32
    %c0_i32_3 = arith.constant 0 : i32
    %7 = arith.cmpi ne, %6, %c0_i32_3 : i32
    scf.if %7 {
      %c0_19 = arith.constant 0 : index
      %c0_20 = arith.constant 0 : index
      %29 = vector.load %arg3[%c0_19, %c0_20] : memref<9x32xf32, #tpu.memory_space<vmem>>, vector<9x32xf32>
      %c0_21 = arith.constant 0 : index
      %c0_22 = arith.constant 0 : index
      %30 = vector.load %arg4[%c0_21, %c0_22] : memref<32x256xf32, #tpu.memory_space<vmem>>, vector<32x256xf32>
      %cst_23 = arith.constant dense<0.000000e+00> : vector<9x256xf32>
      %31 = tpu.matmul %29, %30, %cst_23 {dimension_numbers = #tpu.dot_dimension_numbers<[1], [0], [0], [1], [0, 0, 1, 1], [], []>} : vector<9x32xf32>, vector<32x256xf32>, vector<9x256xf32> -> vector<9x256xf32>
      %c0_24 = arith.constant 0 : index
      %c0_25 = arith.constant 0 : index
      %32 = vector.load %arg6[%c0_24, %c0_25] : memref<9x256xf32, #tpu.memory_space<vmem>>, vector<9x256xf32>
      tpu.vector_store %arg6[%c0_24, %c0_25], %31 {strides = array<i32>} : memref<9x256xf32, #tpu.memory_space<vmem>>, vector<9x256xf32>,
      %c0_26 = arith.constant 0 : index
      %c0_27 = arith.constant 0 : index
      %33 = vector.load %arg9[%c0_26, %c0_27] : memref<1x32xf32, #tpu.memory_space<vmem>>, vector<1x32xf32>
      %34 = arith.mulf %29, %29 : vector<9x32xf32>
      %cst_28 = arith.constant dense<0.000000e+00> : vector<32xf32>
      %35 = vector.multi_reduction <add>, %34, %cst_28 [0] : vector<9x32xf32> to vector<32xf32>
      %36 = vector.shape_cast %35 : vector<32xf32> to vector<1x32xf32>
      %37 = arith.addf %33, %36 : vector<1x32xf32>
      %c0_29 = arith.constant 0 : index
      %c0_30 = arith.constant 0 : index
      %38 = vector.load %arg9[%c0_29, %c0_30] : memref<1x32xf32, #tpu.memory_space<vmem>>, vector<1x32xf32>
      tpu.vector_store %arg9[%c0_29, %c0_30], %37 {strides = array<i32>} : memref<1x32xf32, #tpu.memory_space<vmem>>, vector<1x32xf32>,
    } else {
    }
    %c0 = arith.constant 0 : index
    %c0_4 = arith.constant 0 : index
    %c0_5 = arith.constant 0 : index
    %8 = vector.load %arg2[%c0, %c0_4, %c0_5] : memref<1x9x256xf32, #tpu.memory_space<vmem>>, vector<1x9x256xf32>
    %9 = vector.shape_cast %8 : vector<1x9x256xf32> to vector<9x256xf32>
    %c0_6 = arith.constant 0 : index
    %c0_7 = arith.constant 0 : index
    %10 = vector.load %arg6[%c0_6, %c0_7] : memref<9x256xf32, #tpu.memory_space<vmem>>, vector<9x256xf32>
    %11 = arith.subf %9, %10 : vector<9x256xf32>
    %12 = math.absf %11 : vector<9x256xf32>
    %c0_8 = arith.constant 0 : index
    %c0_9 = arith.constant 0 : index
    %13 = vector.load %arg8[%c0_8, %c0_9] : memref<1x256xf32, #tpu.memory_space<vmem>>, vector<1x256xf32>
    %cst = arith.constant dense<0.000000e+00> : vector<256xf32>
    %14 = vector.multi_reduction <add>, %12, %cst [0] : vector<9x256xf32> to vector<256xf32>
    %15 = vector.shape_cast %14 : vector<256xf32> to vector<1x256xf32>
    %16 = arith.addf %13, %15 : vector<1x256xf32>
    %c0_10 = arith.constant 0 : index
    %c0_11 = arith.constant 0 : index
    %17 = vector.load %arg8[%c0_10, %c0_11] : memref<1x256xf32, #tpu.memory_space<vmem>>, vector<1x256xf32>
    tpu.vector_store %arg8[%c0_10, %c0_11], %16 {strides = array<i32>} : memref<1x256xf32, #tpu.memory_space<vmem>>, vector<1x256xf32>,
    %c0_12 = arith.constant 0 : index
    %c0_13 = arith.constant 0 : index
    %18 = vector.load %arg7[%c0_12, %c0_13] : memref<1x256xf32, #tpu.memory_space<vmem>>, vector<1x256xf32>
    %19 = arith.mulf %12, %12 : vector<9x256xf32>
    %cst_14 = arith.constant dense<0.000000e+00> : vector<256xf32>
    %20 = vector.multi_reduction <add>, %19, %cst_14 [0] : vector<9x256xf32> to vector<256xf32>
    %21 = vector.shape_cast %20 : vector<256xf32> to vector<1x256xf32>
    %22 = arith.addf %18, %21 : vector<1x256xf32>
    %c0_15 = arith.constant 0 : index
    %c0_16 = arith.constant 0 : index
    %23 = vector.load %arg7[%c0_15, %c0_16] : memref<1x256xf32, #tpu.memory_space<vmem>>, vector<1x256xf32>
    tpu.vector_store %arg7[%c0_15, %c0_16], %22 {strides = array<i32>} : memref<1x256xf32, #tpu.memory_space<vmem>>, vector<1x256xf32>,
    %c0_i32_17 = arith.constant 0 : i32
    %24 = arith.cmpi eq, %arg0, %c0_i32_17 : i32
    %c1_i32 = arith.constant 1 : i32
    %25 = arith.cmpi eq, %arg1, %c1_i32 : i32
    %26 = arith.andi %24, %25 : i1
    %27 = arith.extui %26 : i1 to i32
    %c0_i32_18 = arith.constant 0 : i32
    %28 = arith.cmpi ne, %27, %c0_i32_18 : i32
    scf.if %28 {
      %c0_19 = arith.constant 0 : index
      %c0_20 = arith.constant 0 : index
      %29 = vector.load %arg7[%c0_19, %c0_20] : memref<1x256xf32, #tpu.memory_space<vmem>>, vector<1x256xf32>
      %30 = vector.shape_cast %29 : vector<1x256xf32> to vector<1x1x256xf32>
      %cst_21 = arith.constant dense<0.000000e+00> : vector<1xf32>
      %31 = vector.multi_reduction <add>, %30, %cst_21 [1, 2] : vector<1x1x256xf32> to vector<1xf32>
      %32 = vector.shape_cast %31 : vector<1xf32> to vector<1x1x1xf32>
      %33 = vector.extract %32[0, 0, 0] : f32 from vector<1x1x1xf32>
      %c0_22 = arith.constant 0 : index
      %c0_23 = arith.constant 0 : index
      %34 = vector.load %arg8[%c0_22, %c0_23] : memref<1x256xf32, #tpu.memory_space<vmem>>, vector<1x256xf32>
      %35 = vector.shape_cast %34 : vector<1x256xf32> to vector<1x1x256xf32>
      %cst_24 = arith.constant dense<0.000000e+00> : vector<1xf32>
      %36 = vector.multi_reduction <add>, %35, %cst_24 [1, 2] : vector<1x1x256xf32> to vector<1xf32>
      %37 = vector.shape_cast %36 : vector<1xf32> to vector<1x1x1xf32>
      %38 = vector.extract %37[0, 0, 0] : f32 from vector<1x1x1xf32>
      %c0_25 = arith.constant 0 : index
      %c0_26 = arith.constant 0 : index
      %39 = vector.load %arg9[%c0_25, %c0_26] : memref<1x32xf32, #tpu.memory_space<vmem>>, vector<1x32xf32>
      %40 = vector.shape_cast %39 : vector<1x32xf32> to vector<1x1x32xf32>
      %cst_27 = arith.constant dense<0.000000e+00> : vector<1xf32>
      %41 = vector.multi_reduction <add>, %40, %cst_27 [1, 2] : vector<1x1x32xf32> to vector<1xf32>
      %42 = vector.shape_cast %41 : vector<1xf32> to vector<1x1x1xf32>
      %43 = vector.extract %42[0, 0, 0] : f32 from vector<1x1x1xf32>
      %cst_28 = arith.constant 2.000000e+00 : f32
      %44 = arith.divf %33, %cst_28 : f32
      %cst_29 = arith.constant 1.000000e+00 : f32
      %45 = arith.mulf %cst_29, %44 : f32
      %cst_30 = arith.constant 9.000000e+00 : f32
      %46 = arith.divf %45, %cst_30 : f32
      %cst_31 = arith.constant 4.608000e+03 : f32
      %47 = arith.divf %38, %cst_31 : f32
      %c0_32 = arith.constant 0 : index
      %c0_33 = arith.constant 0 : index
      %48 = vector.load %arg4[%c0_32, %c0_33] : memref<32x256xf32, #tpu.memory_space<vmem>>, vector<32x256xf32>
      %49 = arith.mulf %48, %48 : vector<32x256xf32>
      %50 = vector.shape_cast %49 : vector<32x256xf32> to vector<1x32x256xf32>
      %cst_34 = arith.constant dense<0.000000e+00> : vector<1xf32>
      %51 = vector.multi_reduction <add>, %50, %cst_34 [1, 2] : vector<1x32x256xf32> to vector<1xf32>
      %52 = vector.shape_cast %51 : vector<1xf32> to vector<1x1x1xf32>
      %53 = vector.extract %52[0, 0, 0] : f32 from vector<1x1x1xf32>
      %cst_35 = arith.constant 1.000000e-01 : f32
      %54 = arith.mulf %cst_35, %53 : f32
      %cst_36 = arith.constant 1.000000e-01 : f32
      %55 = arith.mulf %cst_36, %43 : f32
      %cst_37 = arith.constant 9.000000e+00 : f32
      %56 = arith.divf %55, %cst_37 : f32
      %c0_38 = arith.constant 0 : index
      %57 = memref.load %arg5[%c0_38] : memref<8xf32, #tpu.memory_space<smem>>
      memref.store %46, %arg5[%c0_38] : memref<8xf32, #tpu.memory_space<smem>>
      %c1 = arith.constant 1 : index
      %58 = memref.load %arg5[%c1] : memref<8xf32, #tpu.memory_space<smem>>
      memref.store %47, %arg5[%c1] : memref<8xf32, #tpu.memory_space<smem>>
      %c2 = arith.constant 2 : index
      %59 = memref.load %arg5[%c2] : memref<8xf32, #tpu.memory_space<smem>>
      memref.store %54, %arg5[%c2] : memref<8xf32, #tpu.memory_space<smem>>
      %c3 = arith.constant 3 : index
      %60 = memref.load %arg5[%c3] : memref<8xf32, #tpu.memory_space<smem>>
      memref.store %56, %arg5[%c3] : memref<8xf32, #tpu.memory_space<smem>>
      %61 = arith.addf %46, %54 : f32
      %62 = arith.addf %61, %56 : f32
      %c4 = arith.constant 4 : index
      %63 = memref.load %arg5[%c4] : memref<8xf32, #tpu.memory_space<smem>>
      memref.store %62, %arg5[%c4] : memref<8xf32, #tpu.memory_space<smem>>
      %cst_39 = arith.constant 0.000000e+00 : f32
      %c5 = arith.constant 5 : index
      %64 = memref.load %arg5[%c5] : memref<8xf32, #tpu.memory_space<smem>>
      memref.store %cst_39, %arg5[%c5] : memref<8xf32, #tpu.memory_space<smem>>
      %cst_40 = arith.constant 0.000000e+00 : f32
      %c6 = arith.constant 6 : index
      %65 = memref.load %arg5[%c6] : memref<8xf32, #tpu.memory_space<smem>>
      memref.store %cst_40, %arg5[%c6] : memref<8xf32, #tpu.memory_space<smem>>
      %cst_41 = arith.constant 0.000000e+00 : f32
      %c7 = arith.constant 7 : index
      %66 = memref.load %arg5[%c7] : memref<8xf32, #tpu.memory_space<smem>>
      memref.store %cst_41, %arg5[%c7] : memref<8xf32, #tpu.memory_space<smem>>
    } else {
    }
    return
  }
  func.func @transform_0(%arg0: i32, %arg1: i32) -> (i32, i32, i32) {
    %c0_i32 = arith.constant 0 : i32
    %c0_i32_0 = arith.constant 0 : i32
    return %arg1, %arg0, %c0_i32 : i32, i32, i32
  }
  func.func @transform_1(%arg0: i32, %arg1: i32) -> (i32, i32) {
    %c0_i32 = arith.constant 0 : i32
    %c0_i32_0 = arith.constant 0 : i32
    return %arg0, %c0_i32 : i32, i32
  }
  func.func @transform_2(%arg0: i32, %arg1: i32) -> (i32, i32) {
    %c0_i32 = arith.constant 0 : i32
    %c0_i32_0 = arith.constant 0 : i32
    %c0_i32_1 = arith.constant 0 : i32
    return %c0_i32, %c0_i32_0 : i32, i32
  }
  func.func @transform_3(%arg0: i32, %arg1: i32) -> i32 {
    %c0_i32 = arith.constant 0 : i32
    %c0_i32_0 = arith.constant 0 : i32
    return %c0_i32 : i32
  }
}

</mosaic_0001>

<bundles_post_ra>
// kernel: fwd.1
= control target key start
LH: loop header
LB: loop body
LE: loop exit
PB: predicated region body
PF: predicated region fallthrough
CT: control target
= control target key end

     0   :  { %8 = vsyncpa [#allocation7], 0  ;;  %s785_s12 = smov 0   ;;  %s787_s13 = smov 0   ;;  %s909_s0 = inlined_call_operand.vmem [shape: f32[2,9,256], index: 0, kind: input, shape index: {}]   ;;  %s910_s1 = inlined_call_operand.vmem [shape: f32[9,32], index: 1, kind: input, shape index: {}]   ;;  %s911_s2 = inlined_call_operand.vmem [shape: f32[32,256], index: 2, kind: input, shape index: {}]   ;;  %s912_s3 = inlined_call_operand.hbm [shape: f32[8], index: 3, kind: output, shape index: {}]  }
   0x1   :  { %s789_s14 = smov 0  }
   0x2 LB: > { %s646_s15 = sadd.s32 4294967295, %s758_s14   ;;  %s23_s16 = sadd.s32 1, %s754_s13  ;;  %s758_s14 = sphi %s789_s14, %s14_s14   ;;  %s754_s13 = sphi %s787_s13, %s914_s13   ;;  %s750_s12 = sphi %s785_s12, %s913_s12  }
   0x3   : > { %p24_p0 = scmp.ge.s32.totalorder %s23_s16, 2  ;;  %p650_p1 = scmp.ge.s32.totalorder %s758_s14, 1 }
   0x4   : > { %p164_p2 = scmp.lt.s32.totalorder %s758_s14, 3 }
   0x5   : > { %s916_s16 = smov (%p24_p0, %s23_s16), 0 }
   0x6   : > { %p165_p3 = pnand %p650_p1, %p164_p2 }
   0x7   : > { %p194_p4 = scmp.lt.s32.totalorder (!%p165_p3), %s750_s12, 1  ;;  %p211_p5 = scmp.eq.s32.totalorder (!%p165_p3), %s750_s12, 0 }
   0x8   : > { %168 = sbr.rel (%p165_p3) target bundleno = 534 (0x216), region = 32 }
   0xf   : > { %s195_s17 = scalar_select %p194_p4, %s750_s12, 1 }
  0x10   : > { %215 = sbr.rel (!%p211_p5) target bundleno = 23 (0x17), region = 36  ;;  %v216_v0 = vlaneseq (%p211_p5)  ;;  %vm222_vm0 = vcmask (%p211_p5), 253952   ;;  %v760_v1 = vmov (%p211_p5), 0.0  }
  0x11   : > { %s662_s18 = sshll.u32 %s195_s17, 5  ;;  %223 = vst.msk [vmem:[#allocation5] sm:$0x1] (%p211_p5), %vm222_vm0, %v760_v1 }
  0x12   : > { %s812_s21 = scalar_lea.vmem %s909_s0, %s662_s18  ;;  %vm218_vm1 = vcmp.lt.s32.totalorder (%p211_p5), %v216_v0, 256 }
  0x13   : > { %220 = vst.msk [vmem:[#allocation3] sm:$0x3] (%p211_p5), %vm218_vm1, %v760_v1  ;;  %221 = vst.msk [vmem:[#allocation4] sm:$0x3] (%p211_p5), %vm218_vm1, %v760_v1 }
  0x17 PF: > { %p654_p6 = scmp.ne.s32.totalorder %s750_s12, 0 }
  0x18   : > { %v230_v2 = vld [vmem:[%s911_s2 + $0x8] sm:$0xff] (!%p654_p6)  ;;  %v232_v3 = vld [vmem:[%s911_s2 + $0x18] sm:$0xff] (!%p654_p6)  ;;  %v229_v4 = vld [vmem:[%s911_s2] sm:$0xff] (!%p654_p6)  ;;  %v761_v9 = vmov (!%p654_p6), 0.0   ;;  %vm329_vm2 = vcmask (!%p654_p6), 253952   ;;  %vm237_vm3 = vcmask (!%p654_p6), 261120  }
  0x19   : > { %226 = sbr.rel (%p654_p6) target bundleno = 249 (0xf9), region = 40  ;;  %v665_v5 = vpack.c.bf16 (!%p654_p6), %v232_v3, %v230_v2  ;;  %v231_v6 = vld [vmem:[%s911_s2 + $0x10] sm:$0xff] (!%p654_p6)  ;;  %v234_v7 = vld [vmem:[%s911_s2 + $0x28] sm:$0xff] (!%p654_p6)  ;;  %v236_v8 = vld [vmem:[%s911_s2 + $0x38] sm:$0xff] (!%p654_p6)  ;;  %308 = vmatprep.mubr.f32.mxu0 (!%p654_p6), %v761_v9  ;;  %314 = vmatprep.mubr.f32.mxu1 (!%p654_p6), %v761_v9 }
  0x1a   : > { %v667_v10 = vpack.c.bf16 (!%p654_p6), %v231_v6, %v229_v4  ;;  %v669_v11 = vpack.c.bf16 (!%p654_p6), %v236_v8, %v234_v7  ;;  %v233_v12 = vld [vmem:[%s911_s2 + $0x20] sm:$0xff] (!%p654_p6)  ;;  %v235_v13 = vld [vmem:[%s911_s2 + $0x30] sm:$0xff] (!%p654_p6)  ;;  %v228_v16 = vld [vmem:[%s910_s1 + $0x8] sm:$0x1] (!%p654_p6) }
  0x1b   : > { %v227_v14 = vld [vmem:[%s910_s1] sm:$0xff] (!%p654_p6)  ;;  %666 = vmatprep.subr.bf16.mxu0 (!%p654_p6), %v665_v5  ;;  %673 = vmatprep.subr.bf16.mxu1 (!%p654_p6), %v665_v5  ;;  %v671_v17 = vpack.c.bf16 (!%p654_p6), %v235_v13, %v233_v12  ;;  %v327_v18 = vmul.f32 (!%p654_p6), %v228_v16, %v228_v16 }
  0x1c   : > { %v326_v15 = vmul.f32 (!%p654_p6), %v227_v14, %v227_v14  ;;  %668 = vmatpush1.bf16.msra.mxu0 (!%p654_p6), %v667_v10  ;;  %675 = vmatpush1.bf16.msra.mxu1 (!%p654_p6), %v667_v10  ;;  %v325_v27 = vld [vmem:[#allocation5] sm:$0x1] (!%p654_p6) }
  0x1d   : > { %670 = vmatprep.subr.bf16.mxu0 (!%p654_p6), %v669_v11  ;;  %674 = vmatprep.subr.bf16.mxu1 (!%p654_p6), %v669_v11  ;;  %v330_v20 = vsel (!%p654_p6), %vm329_vm2, %v327_v18, 0.0 }
  0x1e   : > { %v328_v19 = vsel (!%p654_p6), %vm237_vm3, %v326_v15, 0.0 }
  0x1f   : > { %v331_v21 = vadd.f32 (!%p654_p6), %v330_v20, %v328_v19 }
  0x20   : > { %672 = vmatpush1.bf16.msra.mxu0 %v671_v17  ;;  %676 = vmatpush1.bf16.msra.mxu1 %v671_v17 }
  0x21   : > { %v332_v22 = vrot.slane %v331_v21, 4 }
  0x23   : > { %655 = vmatmul.mubr.msk.f32.vlgmr.msra.gmra.mrb[0].mxu0 %vm237_vm3, %v227_v14  ;;  %656 = vmatmul.mubr.msk.f32.vlgmr.msra.gmra.mrb[0].mxu1 %vm237_vm3, %v228_v16  ;;  %v333_v23 = vadd.f32 %v332_v22, %v331_v21 }
  0x25   : > { %v334_v24 = vrot.slane %v333_v23, 2 }
  0x27   : > { %v335_v25 = vadd.f32 %v334_v24, %v333_v23 }
  0x29   : > { %v336_v26 = vrot.slane %v335_v25, 1 }
  0x2b   : > { %v337_v28 = vadd.f32 %v336_v26, %v335_v25 }
  0x2d   : > { %v338_v29 = vadd.f32 %v337_v28, %v325_v27 }
  0x2f   : > { %339 = vst.msk [vmem:[#allocation5] sm:$0x1] %vm329_vm2, %v338_v29 }
  0xf6   : > { %v310_v30 = vpop.f32.mrb[0].mxu0  ;;  %v316_v31 = vpop.f32.mrb[0].mxu1 }
  0xf7   : > { %321 = vst [vmem:[#allocation2] sm:$0xff] %v310_v30  ;;  %323 = vst [vmem:[#allocation2 + $0x10] sm:$0x1] %v316_v31  ;;  %v312_v32 = vpop.f32.mrb[1].mxu0  ;;  %v318_v33 = vpop.f32.mrb[1].mxu1 }
  0xf8   : > { %322 = vst [vmem:[#allocation2 + $0x8] sm:$0xff] %v312_v32  ;;  %324 = vst [vmem:[#allocation2 + $0x18] sm:$0x1] %v318_v33 }
  0xf9 PF: > { %v340_v34 = vld [vmem:[%s812_s21] sm:$0xff]  ;;  %v341_v35 = vld [vmem:[%s812_s21 + $0x8] sm:$0xff]  ;;  %v342_v36 = vld [vmem:[%s812_s21 + $0x10] sm:$0x1]  ;;  %p439_p7 = scmp.eq.s32.totalorder %s750_s12, 1  ;;  %vm357_vm4 = vcmask 1040384   ;;  %v380_v2 = vlaneseq }
  0xfa   : > { %v343_v37 = vld [vmem:[%s812_s21 + $0x18] sm:$0x1]  ;;  %v762_v0 = vmov 1966171168   ;;  %v356_v31 = vld [vmem:[#allocation4] sm:$0x3] }
  0xfb   : > { %v378_v1 = vunpack.c.l.s4 %v762_v0  ;;  %v381_v12 = vshrl.u32 %v380_v2, 7  ;;  %vm395_vm5 = vcmp.lt.s32.totalorder %v380_v2, 256  ;;  %vm493_vm6 = vcmask (%p439_p7), 253952   ;;  %s763_s8 = smov (%p439_p7), 0.0  }
  0xfc   : > { %563 = sst [smem:[#allocation6 + $0x5]] (%p439_p7), %s763_s8 }
  0xfd   : > { %v379_v11 = vunpack.c.0.s8 %v378_v1  ;;  %565 = sst [smem:[#allocation6 + $0x6]] (%p439_p7), %s763_s8 }
  0xfe   : > { %v344_v38 = vld [vmem:[#allocation2] sm:$0xff]  ;;  %v346_v40 = vld [vmem:[#allocation2 + $0x10] sm:$0x1]  ;;  %567 = sst [smem:[#allocation6 + $0x7]] (%p439_p7), %s763_s8 }
  0xff   : > { %v345_v39 = vld [vmem:[#allocation2 + $0x8] sm:$0xff]  ;;  %v347_v41 = vld [vmem:[#allocation2 + $0x18] sm:$0x1]  ;;  %v348_v42 = vsub.f32 %v340_v34, %v344_v38  ;;  %v350_v44 = vsub.f32 %v342_v36, %v346_v40  ;;  %v382_v21 = vsub.s32 %v379_v11, %v381_v12  ;;  %v398_v34 = vld [vmem:[#allocation3] sm:$0x3]  ;;  %v448_v40 = vsub.s32 (%p439_p7), 0, %v381_v12 }
 0x100   : > { %v349_v43 = vsub.f32 %v341_v35, %v345_v39  ;;  %v351_v45 = vsub.f32 %v343_v37, %v347_v41  ;;  %v492_v38 = vld [vmem:[#allocation5] sm:$0x1] (%p439_p7) }
 0x101   : > { %v352_v46 = vand.u32 2147483647, %v348_v42  ;;  %v354_v48 = vand.u32 2147483647, %v350_v44  ;;  %v494_v41 = vsel (%p439_p7), %vm493_vm6, %v492_v38, 0.0  ;;  %v452_v42 = vsub.s32 (%p439_p7), 1, %v381_v12 }
 0x102   : > { %v353_v47 = vand.u32 2147483647, %v349_v43  ;;  %v355_v49 = vand.u32 2147483647, %v351_v45  ;;  %v513_v44 = vld [vmem:[%s911_s2] sm:$0xff] (%p439_p7)  ;;  %v514_v45 = vld [vmem:[%s911_s2 + $0x8] sm:$0xff] (%p439_p7)  ;;  %495 = vadd.xlane.f32.xlu1 (%p439_p7), %v494_v41 }
 0x103   : > { %v399_v50 = vmul.f32 %v352_v46, %v352_v46  ;;  %v358_v52 = vsel %vm357_vm4, %v354_v48, 0.0  ;;  %v401_v54 = vmul.f32 %v354_v48, %v354_v48  ;;  %v515_v48 = vld [vmem:[%s911_s2 + $0x10] sm:$0xff] (%p439_p7) }
 0x104   : > { %v400_v51 = vmul.f32 %v353_v47, %v353_v47  ;;  %v366_v53 = vsel %vm357_vm4, %v355_v49, 0.0  ;;  %v402_v55 = vmul.f32 %v355_v49, %v355_v49  ;;  %v359_v56 = vadd.f32 %v358_v52, %v352_v46 }
 0x105   : > { %v367_v57 = vadd.f32 %v366_v53, %v353_v47  ;;  %v403_v58 = vsel %vm357_vm4, %v401_v54, 0.0  ;;  %v521_v49 = vmul.f32 (%p439_p7), %v513_v44, %v513_v44  ;;  %v516_v53 = vld [vmem:[%s911_s2 + $0x18] sm:$0xff] (%p439_p7) }
 0x106   : > { %v411_v59 = vsel %vm357_vm4, %v402_v55, 0.0  ;;  %v360_v60 = vrot.slane %v359_v56, 4  ;;  %v404_v62 = vadd.f32 %v403_v58, %v399_v50  ;;  %v522_v50 = vmul.f32 (%p439_p7), %v514_v45, %v514_v45 }
 0x107   : > { %v368_v61 = vrot.slane %v367_v57, 4  ;;  %v412_v63 = vadd.f32 %v411_v59, %v400_v51  ;;  %v523_v55 = vmul.f32 (%p439_p7), %v515_v48, %v515_v48  ;;  %v517_v59 = vld [vmem:[%s911_s2 + $0x20] sm:$0xff] (%p439_p7) }
 0x108   : > { %v361_v3 = vadd.f32 %v360_v60, %v359_v56  ;;  %v405_v5 = vrot.slane %v404_v62, 4  ;;  %v525_v1 = vmul.f32 (%p439_p7), %v517_v59, %v517_v59 }
 0x109   : > { %v369_v4 = vadd.f32 %v368_v61, %v367_v57  ;;  %v413_v6 = vrot.slane %v412_v63, 4  ;;  %v524_v61 = vmul.f32 (%p439_p7), %v516_v53, %v516_v53 }
 0x10a   : > { %v362_v7 = vrot.slane %v361_v3, 2  ;;  %v406_v9 = vadd.f32 %v405_v5, %v404_v62  ;;  %v529_v62 = vadd.f32 (%p439_p7), %v522_v50, %v521_v49 }
 0x10b   : > { %v370_v8 = vrot.slane %v369_v4, 2  ;;  %v414_v10 = vadd.f32 %v413_v6, %v412_v63  ;;  %v518_v63 = vld [vmem:[%s911_s2 + $0x28] sm:$0xff] (%p439_p7)  ;;  %v520_v6 = vld [vmem:[%s911_s2 + $0x38] sm:$0xff] (%p439_p7) }
 0x10c   : > { %v363_v13 = vadd.f32 %v362_v7, %v361_v3  ;;  %v407_v15 = vrot.slane %v406_v9, 2  ;;  %v530_v2 = vadd.f32 (%p439_p7), %v529_v62, %v523_v55  ;;  %v519_v3 = vld [vmem:[%s911_s2 + $0x30] sm:$0xff] (%p439_p7) }
 0x10d   : > { %v371_v14 = vadd.f32 %v370_v8, %v369_v4  ;;  %v415_v16 = vrot.slane %v414_v10, 2  ;;  %v526_v4 = vmul.f32 (%p439_p7), %v518_v63, %v518_v63  ;;  %v527_v7 = vmul.f32 (%p439_p7), %v519_v3, %v519_v3 }
 0x10e   : > { %v364_v17 = vrot.slane %v363_v13, 1  ;;  %v408_v19 = vadd.f32 %v407_v15, %v406_v9  ;;  %v531_v5 = vadd.f32 (%p439_p7), %v530_v2, %v524_v61  ;;  %v528_v9 = vmul.f32 (%p439_p7), %v520_v6, %v520_v6 }
 0x10f   : > { %v372_v18 = vrot.slane %v371_v14, 1  ;;  %v416_v20 = vadd.f32 %v415_v16, %v414_v10 }
 0x110   : > { %v365_v22 = vadd.f32 %v364_v17, %v363_v13  ;;  %v409_v24 = vrot.slane %v408_v19, 1  ;;  %v532_v8 = vadd.f32 (%p439_p7), %v531_v5, %v525_v1 }
 0x111   : > { %v373_v23 = vadd.f32 %v372_v18, %v371_v14  ;;  %v417_v25 = vrot.slane %v416_v20, 1 }
 0x112   : > { %v410_v27 = vadd.f32 %v409_v24, %v408_v19  ;;  %v533_v10 = vadd.f32 (%p439_p7), %v532_v8, %v526_v4 }
 0x113   : > { %v376_v26 = vcombine.low %v365_v22, %v373_v23  ;;  %v418_v28 = vadd.f32 %v417_v25, %v416_v20 }
 0x114   : > { %v534_v11 = vadd.f32 (%p439_p7), %v533_v10, %v527_v7 }
 0x115   : > { %v383_v29 = vrot.slane %v376_v26, %v382_v21  ;;  %v421_v30 = vcombine.low %v410_v27, %v418_v28 }
 0x116   : > { %v535_v12 = vadd.f32 (%p439_p7), %v534_v11, %v528_v9 }
 0x117   : > { %v390_v32 = vrot.slane %v383_v29, %v382_v21  ;;  %v428_v33 = vrot.slane %v421_v30, %v382_v21  ;;  %443 = sbr.rel (!%p439_p7) target bundleno = 519 (0x207), region = 44 }
 0x118   : > { %536 = vadd.xlane.f32.xlu1 (%p439_p7), %v535_v12 }
 0x119   : > { %v392_v35 = vadd.f32 %v390_v32, %v356_v31  ;;  %v435_v36 = vrot.slane %v428_v33, %v382_v21 }
 0x11b   : > { %397 = vst.msk [vmem:[#allocation4] sm:$0x3] %vm395_vm5, %v392_v35  ;;  %v437_v37 = vadd.f32 %v435_v36, %v398_v34 }
 0x11d   : > { %438 = vst.msk [vmem:[#allocation3] sm:$0x3] %vm395_vm5, %v437_v37 }
 0x122   : > { %v468_v43 = vld [vmem:[#allocation4] sm:$0x3] }
 0x123   : > { %v473_v47 = vrot.slane %v468_v43, %v448_v40  ;;  %v477_v52 = vrot.slane %v468_v43, %v452_v42 }
 0x124   : > { %v444_v39 = vld [vmem:[#allocation3] sm:$0x3] }
 0x125   : > { %v449_v46 = vrot.slane %v444_v39, %v448_v40  ;;  %v453_v51 = vrot.slane %v444_v39, %v452_v42  ;;  %v480_v57 = vsel %vm357_vm4, %v473_v47, 0.0  ;;  %v481_v58 = vsel %vm357_vm4, %v477_v52, 0.0 }
 0x126   : > { %v482_v0 = vadd.f32 %v481_v58, %v480_v57 }
 0x127   : > { %v456_v54 = vsel %vm357_vm4, %v449_v46, 0.0  ;;  %v457_v56 = vsel %vm357_vm4, %v453_v51, 0.0 }
 0x128   : > { %v458_v60 = vadd.f32 %v457_v56, %v456_v54 }
 0x12a   : > { %459 = vadd.xlane.f32.xlu0 %v458_v60 }
 0x12e   : > { %483 = vadd.xlane.f32.xlu0 %v482_v0 }
 0x18f   : > { %v496_v13 = vpop.xlane.xlu1 %495 }
 0x190   : > { %v497_v14 = vrot.slane %v496_v13, 4 }
 0x192   : > { %v498_v15 = vadd.f32 %v497_v14, %v496_v13 }
 0x194   : > { %v499_v19 = vrot.slane %v498_v15, 2 }
 0x196   : > { %v500_v25 = vadd.f32 %v499_v19, %v498_v15 }
 0x198   : > { %v501_v31 = vrot.slane %v500_v25, 1 }
 0x19a   : > { %v502_v36 = vadd.f32 %v501_v31, %v500_v25 }
 0x1a5   : > { %v537_v30 = vpop.xlane.xlu1 %536 }
 0x1a6   : > { %v538_v32 = vrot.slane %v537_v30, 4 }
 0x1a8   : > { %v539_v34 = vadd.f32 %v538_v32, %v537_v30 }
 0x1aa   : > { %v540_v37 = vrot.slane %v539_v34, 2 }
 0x1ac   : > { %v541_v38 = vadd.f32 %v540_v37, %v539_v34 }
 0x1ae   : > { %v542_v39 = vrot.slane %v541_v38, 1 }
 0x1b0   : > { %v543_v40 = vadd.f32 %v542_v39, %v541_v38 }
 0x1b7   : > { %v460_v16 = vpop.xlane.xlu0 %459 }
 0x1b8   : > { %v461_v17 = vrot.slane %v460_v16, 4 }
 0x1ba   : > { %v462_v18 = vadd.f32 %v461_v17, %v460_v16 }
 0x1bb   : > { %v484_v20 = vpop.xlane.xlu0 %483 }
 0x1bc   : > { %v463_v21 = vrot.slane %v462_v18, 2  ;;  %v485_v22 = vrot.slane %v484_v20, 4 }
 0x1be   : > { %v486_v23 = vadd.f32 %v485_v22, %v484_v20  ;;  %v464_v24 = vadd.f32 %v463_v21, %v462_v18 }
 0x1c0   : > { %v487_v26 = vrot.slane %v486_v23, 2  ;;  %v465_v27 = vrot.slane %v464_v24, 1 }
 0x1c2   : > { %v488_v28 = vadd.f32 %v487_v26, %v486_v23  ;;  %v466_v29 = vadd.f32 %v465_v27, %v464_v24 }
 0x1c4   : > { %677 = vpush %v466_v29  ;;  %v489_v33 = vrot.slane %v488_v28, 1 }
 0x1c6   : > { %v490_v35 = vadd.f32 %v489_v33, %v488_v28 }
 0x1c8   : > { %679 = vpush %v490_v35 }
 0x1c9   : > { %681 = vpush %v502_v36 }
 0x1ca   : > { %683 = vpush %v543_v40 }
 0x1f5   : > { %s678_s9 = spop %677 }
 0x1f6   : > { %s506_s10 = smul.f32 0.5, %s678_s9 }
 0x1f8   : > { %s509_s11 = smul.f32 0.11111111, %s506_s10 }
 0x1f9   : > { %s680_s17 = spop %679 }
 0x1fa   : > { %551 = sst [smem:[#allocation6]] %s509_s11  ;;  %s512_s18 = smul.f32 0.00021701389, %s680_s17 }
 0x1fb   : > { %s682_s19 = spop %681 }
 0x1fc   : > { %553 = sst [smem:[#allocation6 + $0x1]] %s512_s18  ;;  %s546_s20 = smul.f32 0.1, %s682_s19 }
 0x1fd   : > { %s684_s22 = spop %683 }
 0x1fe   : > { %s549_s21 = smul.f32 0.11111111, %s546_s20 }
 0x1ff   : > { %s545_s23 = smul.f32 0.1, %s684_s22 }
 0x200   : > { %557 = sst [smem:[#allocation6 + $0x3]] %s549_s21 }
 0x201   : > { %555 = sst [smem:[#allocation6 + $0x2]] %s545_s23 }
 0x202   : > { %s558_s12 = sadd.f32 %s545_s23, %s509_s11 }
 0x204   : > { %s559_s24 = sadd.f32 %s558_s12, %s549_s21 }
 0x206   : > { %561 = sst [smem:[#allocation6 + $0x4]] %s559_s24 }
 0x207 PF: > { %p689_p8 = scmp.eq.s32.totalorder %s646_s15, 1  ;;  %s720_s27 = scalar_lea.hbm %s912_s3, 16 }
 0x208   : > { %p721_p9 = scmp.ne.s32.totalorder %s912_s3, %s720_s27  ;;  %p726_p12 = scmp.lt.u32.totalorder %s720_s27, %s912_s3 }
 0x20a   : > { %p722_p10 = pnand %p721_p9, %p689_p8 }
 0x20c   : > { %p723_p11 = pneg %p722_p10 }
 0x20e   : > { %p728_p13 = pnand %p726_p12, %p723_p11 }
 0x210   : > { %731 = shalt.err (!%p728_p13)
}
 0x211   : > { %s764_s5 = smov [#allocation6]  }
 0x212   : > { %686 = dma.smem_to_hbm (%p689_p8), %s764_s5, 16, %s912_s3, [#allocation7]  }
 0x213   : > { %745 = dma.done.wait (%p689_p8), [#allocation7], 16  }
 0x214   : > { %747 = vsyncadd (%p689_p8), [#allocation7], 4294967280 }
 0x215   : > { %581 = sfence }
 0x216 PF: > { %s14_s14 = sadd.s32 1, %s758_s14   ;;  %s913_s12 = smov %s754_s13 }
 0x217   : > { %p11_p0 = scmp.ge.s32.totalorder %s14_s14, 4   ;;  %s914_s13 = smov %s916_s16 }
 0x219   :  { %13 = sbr.rel (!%p11_p0) target bundleno = 2 (0x2), region = 82 }
 0x220   :  { %587 = vsyncpa [#allocation7], 1 }
 0x221   :  { %589 = vsyncpa [#allocation7 + $0x1], 1 }

</bundles_post_ra>
